<compile_context>
chip_gen: v7x
topology: tpu7x:2x2x1
jax: 0.10.0
libtpu: 0.0.40
codegen_flags: <defaults>
</compile_context>

<pallas_src>
import math

import jax
import jax.numpy as jnp
from jax import lax
from jax.experimental import pallas as pl
from jax.experimental.pallas import tpu as pltpu


# ---------------------------------------------------------------------------
# tiling helpers
# ---------------------------------------------------------------------------
def _row_tile(n, max_tile):
    """Full extent if it fits, otherwise the (8/128-aligned) max tile."""
    return n if n <= max_tile else max_tile


def _attn_row_tile(n, k, d, per_array_bytes=1 << 20):
    """Row tile for attention: keep each (TN, K, D) f32 working array ~1 MiB."""
    tn = max(8, (per_array_bytes // max(1, k * d * 4)) // 8 * 8)
    return n if n <= tn else tn


# ---------------------------------------------------------------------------
# Kernel 1: pairwise squared distance via norms + MXU matmul
#   dists[b, i, j] = ||xi||^2 + ||xj||^2 - 2 * xi . xj
# ---------------------------------------------------------------------------
def _sqdist_kernel(xi_ref, xjt_ref, o_ref):
    xi = xi_ref[...]                                    # (TI, C)
    xjt = xjt_ref[...]                                  # (C, TJ)  (pre-transposed in wrapper)
    sq_i = jnp.sum(xi * xi, axis=1, keepdims=True)      # (TI, 1)  lane reduction
    sq_j = jnp.sum(xjt * xjt, axis=0, keepdims=True)    # (1, TJ)  sublane reduction
    cross = jnp.dot(xi, xjt, preferred_element_type=jnp.float32)   # (TI, TJ) on the MXU
    o_ref[...] = sq_i + sq_j - 2.0 * cross


def square_distance(xyz, *, tile=256):
    B, N, C = xyz.shape
    xyz_t = jnp.swapaxes(xyz, 1, 2)                     # (B, C, N): tiny layout plumbing
    ti = _row_tile(N, tile)
    tj = _row_tile(N, tile)
    grid = (B, pl.cdiv(N, ti), pl.cdiv(N, tj))
    return pl.pallas_call(
        _sqdist_kernel,
        grid=grid,
        in_specs=[
            pl.BlockSpec((None, ti, C), lambda b, i, j: (b, i, 0)),
            pl.BlockSpec((None, C, tj), lambda b, i, j: (b, 0, j)),
        ],
        out_specs=pl.BlockSpec((None, ti, tj), lambda b, i, j: (b, i, j)),
        out_shape=jax.ShapeDtypeStruct((B, N, N), jnp.float32),
        compiler_params=pltpu.CompilerParams(
            dimension_semantics=("parallel", "parallel", "parallel")),
    )(xyz, xyz_t)


# ---------------------------------------------------------------------------
# Kernel 2: fused fc1 + q/k/v projection (row-tiled)
#   x   = features @ W1 + b1
#   qkv = x @ [Wq | Wk | Wv]           (q/k/v are bias-free in the reference module)
# ---------------------------------------------------------------------------
def _fused_qkv_kernel(f_ref, w1_ref, b1_ref, wqkv_ref, o_ref):
    x = jnp.dot(f_ref[...], w1_ref[...], preferred_element_type=jnp.float32) + b1_ref[...]
    o_ref[...] = jnp.dot(x, wqkv_ref[...], preferred_element_type=jnp.float32)


def fused_fc1_qkv(features2d, w1, b1, wqkv, *, row_tile=512):
    M, P = features2d.shape
    D = w1.shape[1]
    D3 = wqkv.shape[1]
    tm = _row_tile(M, row_tile)
    grid = (pl.cdiv(M, tm),)
    return pl.pallas_call(
        _fused_qkv_kernel,
        grid=grid,
        in_specs=[
            pl.BlockSpec((tm, P), lambda i: (i, 0)),
            pl.BlockSpec((P, D), lambda i: (0, 0)),
            pl.BlockSpec((1, D), lambda i: (0, 0)),
            pl.BlockSpec((D, D3), lambda i: (0, 0)),
        ],
        out_specs=pl.BlockSpec((tm, D3), lambda i: (i, 0)),
        out_shape=jax.ShapeDtypeStruct((M, D3), jnp.float32),
        compiler_params=pltpu.CompilerParams(dimension_semantics=("parallel",)),
    )(features2d, w1, b1, wqkv)


# ---------------------------------------------------------------------------
# Kernel 3: fused point-transformer attention, tiled over (B, N/TN)
#   pos_k    = fc_delta(xyz_i - xyz_knn_k)
#   logits_k = fc_gamma(q_i - k_knn_k + pos_k)     (1/sqrt(D) folded into gamma layer 2)
#   attn     = softmax_k(logits)
#   res      = sum_k attn_k * (v_knn_k + pos_k)
# Neighbour arrays arrive neighbour-major as (B, K, N, D) / (B, K, N, 2) so that every
# per-neighbour slice is a clean contiguous (TN, D) / (TN, 2) 2-D tile.
# ---------------------------------------------------------------------------
def _attn_kernel(q_ref, kg_ref, vg_ref, rel_ref,
                 dw1_ref, db1_ref, dw2_ref, db2_ref,
                 gw1_ref, gb1_ref, gw2_ref, gb2_ref,
                 attn_ref, res_ref):
    K = kg_ref.shape[0]

    q = q_ref[...]                       # (TN, D)
    w0 = dw1_ref[0:1, :]                 # (1, D)  fc_delta layer-1 row (x coordinate)
    w1 = dw1_ref[1:2, :]                 # (1, D)  fc_delta layer-1 row (y coordinate)
    db1 = db1_ref[...]                   # (1, D)
    dw2 = dw2_ref[...]                   # (D, D)
    db2 = db2_ref[...]                   # (1, D)
    gw1 = gw1_ref[...]                   # (D, D)
    gb1 = gb1_ref[...]                   # (1, D)
    gw2 = gw2_ref[...]                   # (D, D)  pre-scaled by 1/sqrt(D)
    gb2 = gb2_ref[...]                   # (1, D)  pre-scaled by 1/sqrt(D)

    pos_list = []
    logit_list = []
    for kk in range(K):                  # static unroll over the (small) neighbour axis
        relk = rel_ref[kk]               # (TN, 2)
        # fc_delta layer 1: depth-2 contraction done with broadcasts (no depth-2 MXU matmul)
        h = relk[:, 0:1] * w0 + relk[:, 1:2] * w1 + db1
        h = jnp.maximum(h, 0.0)
        pos = jnp.dot(h, dw2, preferred_element_type=jnp.float32) + db2          # (TN, D)
        t = q - kg_ref[kk] + pos
        g = jnp.maximum(
            jnp.dot(t, gw1, preferred_element_type=jnp.float32) + gb1, 0.0)
        logit = jnp.dot(g, gw2, preferred_element_type=jnp.float32) + gb2        # (TN, D)
        pos_list.append(pos)
        logit_list.append(logit)

    # numerically-stable softmax over the neighbour axis (dim=-2 in the PyTorch reference)
    m = logit_list[0]
    for kk in range(1, K):
        m = jnp.maximum(m, logit_list[kk])
    e_list = [jnp.exp(l - m) for l in logit_list]
    s = e_list[0]
    for kk in range(1, K):
        s = s + e_list[kk]
    inv = pl.reciprocal(s, approx=True)  # EUP slot instead of a VPU divide

    acc = None
    for kk in range(K):
        a = e_list[kk] * inv             # (TN, D)
        attn_ref[:, kk, :] = a
        term = a * (vg_ref[kk] + pos_list[kk])
        acc = term if acc is None else acc + term
    res_ref[...] = acc


def attention(q, kg, vg, rel, delta_params, gamma_params, *, row_tile=None):
    B, K, N, D = kg.shape
    dw1, db1, dw2, db2 = delta_params
    gw1, gb1, gw2, gb2 = gamma_params
    tn = _attn_row_tile(N, K, D) if row_tile is None else row_tile
    grid = (B, pl.cdiv(N, tn))
    w = lambda shp: pl.BlockSpec(shp, lambda b, i: (0, 0))
    return pl.pallas_call(
        _attn_kernel,
        grid=grid,
        in_specs=[
            pl.BlockSpec((None, tn, D), lambda b, i: (b, i, 0)),        # q
            pl.BlockSpec((None, K, tn, D), lambda b, i: (b, 0, i, 0)),  # gathered k
            pl.BlockSpec((None, K, tn, D), lambda b, i: (b, 0, i, 0)),  # gathered v
            pl.BlockSpec((None, K, tn, 2), lambda b, i: (b, 0, i, 0)),  # xyz_i - xyz_knn
            w((2, D)), w((1, D)), w((D, D)), w((1, D)),                 # fc_delta
            w((D, D)), w((1, D)), w((D, D)), w((1, D)),                 # fc_gamma (scaled)
        ],
        out_specs=[
            pl.BlockSpec((None, tn, K, D), lambda b, i: (b, i, 0, 0)),  # attn
            pl.BlockSpec((None, tn, D), lambda b, i: (b, i, 0)),        # res (pre fc2)
        ],
        out_shape=(
            jax.ShapeDtypeStruct((B, N, K, D), jnp.float32),
            jax.ShapeDtypeStruct((B, N, D), jnp.float32),
        ),
        compiler_params=pltpu.CompilerParams(
            dimension_semantics=("parallel", "parallel"),
            vmem_limit_bytes=32 * 1024 * 1024),
    )(q, kg, vg, rel, dw1, db1, dw2, db2, gw1, gb1, gw2, gb2)


# ---------------------------------------------------------------------------
# Kernel 4: fc2 + residual add (row-tiled)
# ---------------------------------------------------------------------------
def _linear_residual_kernel(x_ref, w_ref, b_ref, r_ref, o_ref):
    o_ref[...] = (
        jnp.dot(x_ref[...], w_ref[...], preferred_element_type=jnp.float32)
        + b_ref[...]
        + r_ref[...]
    )


def linear_residual(x2d, w, b, r2d, *, row_tile=512):
    M, Din = x2d.shape
    Dout = w.shape[1]
    tm = _row_tile(M, row_tile)
    grid = (pl.cdiv(M, tm),)
    return pl.pallas_call(
        _linear_residual_kernel,
        grid=grid,
        in_specs=[
            pl.BlockSpec((tm, Din), lambda i: (i, 0)),
            pl.BlockSpec((Din, Dout), lambda i: (0, 0)),
            pl.BlockSpec((1, Dout), lambda i: (0, 0)),
            pl.BlockSpec((tm, Dout), lambda i: (i, 0)),
        ],
        out_specs=pl.BlockSpec((tm, Dout), lambda i: (i, 0)),
        out_shape=jax.ShapeDtypeStruct((M, Dout), jnp.float32),
        compiler_params=pltpu.CompilerParams(dimension_semantics=("parallel",)),
    )(x2d, w, b, r2d)


# ---------------------------------------------------------------------------
# Module wrapper (parameter setup + XLA glue)
# ---------------------------------------------------------------------------
def _init_linear(key, fan_in, fan_out, bias=True):
    """PyTorch-style default init; weight stored transposed as (fan_in, fan_out)."""
    kw, kb = jax.random.split(key)
    bound = 1.0 / math.sqrt(fan_in)
    w = jax.random.uniform(kw, (fan_in, fan_out), jnp.float32, -bound, bound)
    if bias:
        b = jax.random.uniform(kb, (1, fan_out), jnp.float32, -bound, bound)
    else:
        b = jnp.zeros((1, fan_out), jnp.float32)
    return w, b


def _index_points(points, idx):
    """points: (B, N, C), idx: (B, ...) int -> (B, ..., C)   (plain-JAX gather)."""
    return jax.vmap(lambda p, i: p[i])(points, idx)


class TransformerBlockPallas:
    def __init__(self, d_points, d_model, k, key):
        self.d_points, self.d_model, self.k = d_points, d_model, k
        keys = jax.random.split(key, 9)
        self.fc1_w, self.fc1_b = _init_linear(keys[0], d_points, d_model)
        self.fc2_w, self.fc2_b = _init_linear(keys[1], d_model, d_points)
        self.delta1_w, self.delta1_b = _init_linear(keys[2], 2, d_model)
        self.delta2_w, self.delta2_b = _init_linear(keys[3], d_model, d_model)
        self.gamma1_w, self.gamma1_b = _init_linear(keys[4], d_model, d_model)
        self.gamma2_w, self.gamma2_b = _init_linear(keys[5], d_model, d_model)
        self.wqs_w, _ = _init_linear(keys[6], d_model, d_model, bias=False)
        self.wks_w, _ = _init_linear(keys[7], d_model, d_model, bias=False)
        self.wvs_w, _ = _init_linear(keys[8], d_model, d_model, bias=False)
        # fused bias-free q/k/v projection: one lane-dense (D, 3D) matmul
        self.wqkv = jnp.concatenate([self.wqs_w, self.wks_w, self.wvs_w], axis=1)
        # fold the 1/sqrt(d_model) softmax scale into fc_gamma's last layer once
        scale = 1.0 / math.sqrt(float(d_model))
        self.gamma2_w_scaled = self.gamma2_w * scale
        self.gamma2_b_scaled = self.gamma2_b * scale

    def knn(self, xyz):
        dists = square_distance(xyz)                          # Pallas (MXU)
        _, idx = lax.top_k(-dists, self.k)                    # k smallest distances
        return idx                                            # (B, N, K)

    def __call__(self, xyz, features, knn_idx=None):
        B, N, _ = xyz.shape
        D, P, K = self.d_model, self.d_points, self.k
        if knn_idx is None:
            knn_idx = self.knn(xyz)

        # TODO(synk): the data-dependent kNN gather stays in XLA glue; an in-kernel
        # scalar-prefetch / DMA gather would remove the (B, K, N, D) intermediates.
        idx_t = jnp.swapaxes(knn_idx, 1, 2)                   # (B, K, N) neighbour-major
        knn_xyz = _index_points(xyz, idx_t)                   # (B, K, N, 2)
        rel = xyz[:, None, :, :] - knn_xyz                    # (B, K, N, 2)

        pre = features
        qkv = fused_fc1_qkv(features.reshape(B * N, P),
                            self.fc1_w, self.fc1_b, self.wqkv)
        qkv = qkv.reshape(B, N, 3 * D)
        q = qkv[..., :D]                                      # (B, N, D)
        kg = _index_points(qkv[..., D:2 * D], idx_t)          # (B, K, N, D)
        vg = _index_points(qkv[..., 2 * D:], idx_t)           # (B, K, N, D)

        attn, res = attention(
            q, kg, vg, rel,
            (self.delta1_w, self.delta1_b, self.delta2_w, self.delta2_b),
            (self.gamma1_w, self.gamma1_b, self.gamma2_w_scaled, self.gamma2_b_scaled),
        )

        out = linear_residual(res.reshape(B * N, D), self.fc2_w, self.fc2_b,
                              pre.reshape(B * N, P)).reshape(B, N, P)
        return out, attn


# ---------------------------------------------------------------------------
# pure-JAX reference (mirrors the PyTorch forward exactly, using a shared knn_idx)
# ---------------------------------------------------------------------------
def reference_forward(block, xyz, features, knn_idx):
    D = block.d_model
    gather = lambda p, i: jax.vmap(lambda pp, ii: pp[ii])(p, i)
    knn_xyz = gather(xyz, knn_idx)                                        # (B, N, K, 2)
    pre = features
    x = features @ block.fc1_w + block.fc1_b
    q = x @ block.wqs_w
    k = gather(x @ block.wks_w, knn_idx)
    v = gather(x @ block.wvs_w, knn_idx)
    rel = xyz[:, :, None, :] - knn_xyz
    pos = (jax.nn.relu(rel @ block.delta1_w + block.delta1_b)
           @ block.delta2_w + block.delta2_b)
    logits = (jax.nn.relu((q[:, :, None, :] - k + pos) @ block.gamma1_w + block.gamma1_b)
              @ block.gamma2_w + block.gamma2_b)
    attn = jax.nn.softmax(logits / jnp.sqrt(jnp.float32(D)), axis=-2)
    res = jnp.einsum('bmnf,bmnf->bmf', attn, v + pos)
    res = res @ block.fc2_w + block.fc2_b + pre
    return res, attn


if __name__ == "__main__":
    B, N, d_points, d_model, K = 2, 16, 8, 32, 4
    key = jax.random.PRNGKey(0)
    k_xyz, k_feat, k_params = jax.random.split(key, 3)

    xyz = jax.random.uniform(k_xyz, (B, N, 2), dtype=jnp.float32)
    features = jax.random.normal(k_feat, (B, N, d_points), dtype=jnp.float32)

    block = TransformerBlockPallas(d_points, d_model, K, k_params)
    knn_idx = block.knn(xyz)
    res, attn = block(xyz, features, knn_idx=knn_idx)
    res, attn = jax.block_until_ready((res, attn))

    ref_res, ref_attn = reference_forward(block, xyz, features, knn_idx)

    assert res.shape == (B, N, d_points)
    assert attn.shape == (B, N, K, d_model)
    assert bool(jnp.all(jnp.isfinite(res))) and bool(jnp.all(jnp.isfinite(attn)))
    # softmax over the neighbour axis sums to 1 (approx reciprocal -> loose atol)
    assert bool(jnp.allclose(jnp.sum(attn, axis=2), 1.0, atol=1e-2))
    # match the pure-JAX reference of the PyTorch forward
    assert bool(jnp.allclose(attn, ref_attn, rtol=1e-2, atol=1e-2))
    assert bool(jnp.allclose(res, ref_res, rtol=2e-2, atol=2e-2))
    print("KERNEL_OK")
</pallas_src>

<mosaic_0001>
module attributes {stable_mosaic.version = 11 : i64} {
  func.func @_sqdist_kernel(%arg0: i32, %arg1: i32, %arg2: i32, %arg3: memref<1x16x2xf32, #tpu.memory_space<vmem>>, %arg4: memref<1x2x16xf32, #tpu.memory_space<vmem>>, %arg5: memref<1x16x16xf32, #tpu.memory_space<vmem>>) attributes {dimension_semantics = [#tpu.dimension_semantics<parallel>, #tpu.dimension_semantics<parallel>, #tpu.dimension_semantics<parallel>], iteration_bounds = array<i64: 2, 1, 1>, scalar_prefetch = 0 : i64, scratch_operands = 0 : i64, tpu.core_type = #tpu.core_type<tc>, window_params = [{transform_indices = @transform_0, window_bounds = array<i64: 1, 16, 2>}, {transform_indices = @transform_1, window_bounds = array<i64: 1, 2, 16>}, {transform_indices = @transform_2, window_bounds = array<i64: 1, 16, 16>}]} {
    %c0 = arith.constant 0 : index
    %c0_0 = arith.constant 0 : index
    %c0_1 = arith.constant 0 : index
    %0 = vector.load %arg3[%c0, %c0_0, %c0_1] : memref<1x16x2xf32, #tpu.memory_space<vmem>>, vector<1x16x2xf32>
    %1 = vector.shape_cast %0 : vector<1x16x2xf32> to vector<16x2xf32>
    %c0_2 = arith.constant 0 : index
    %c0_3 = arith.constant 0 : index
    %c0_4 = arith.constant 0 : index
    %2 = vector.load %arg4[%c0_2, %c0_3, %c0_4] : memref<1x2x16xf32, #tpu.memory_space<vmem>>, vector<1x2x16xf32>
    %3 = vector.shape_cast %2 : vector<1x2x16xf32> to vector<2x16xf32>
    %4 = arith.mulf %1, %1 : vector<16x2xf32>
    %cst = arith.constant dense<0.000000e+00> : vector<16xf32>
    %5 = vector.multi_reduction <add>, %4, %cst [1] : vector<16x2xf32> to vector<16xf32>
    %6 = vector.shape_cast %5 : vector<16xf32> to vector<16x1xf32>
    %7 = arith.mulf %3, %3 : vector<2x16xf32>
    %cst_5 = arith.constant dense<0.000000e+00> : vector<16xf32>
    %8 = vector.multi_reduction <add>, %7, %cst_5 [0] : vector<2x16xf32> to vector<16xf32>
    %9 = vector.shape_cast %8 : vector<16xf32> to vector<1x16xf32>
    %cst_6 = arith.constant dense<0.000000e+00> : vector<16x16xf32>
    %10 = tpu.matmul %1, %3, %cst_6 {dimension_numbers = #tpu.dot_dimension_numbers<[1], [0], [0], [1], [0, 0, 1, 1], [], []>} : vector<16x2xf32>, vector<2x16xf32>, vector<16x16xf32> -> vector<16x16xf32>
    %11 = vector.broadcast %6 : vector<16x1xf32> to vector<16x16xf32>
    %12 = vector.broadcast %9 : vector<1x16xf32> to vector<16x16xf32>
    %13 = arith.addf %11, %12 : vector<16x16xf32>
    %cst_7 = arith.constant 2.000000e+00 : f32
    %14 = vector.broadcast %cst_7 : f32 to vector<16x16xf32>
    %15 = arith.mulf %14, %10 : vector<16x16xf32>
    %16 = arith.subf %13, %15 : vector<16x16xf32>
    %c0_8 = arith.constant 0 : index
    %c0_9 = arith.constant 0 : index
    %c0_10 = arith.constant 0 : index
    %17 = vector.load %arg5[%c0_8, %c0_9, %c0_10] : memref<1x16x16xf32, #tpu.memory_space<vmem>>, vector<1x16x16xf32>
    %18 = vector.shape_cast %17 : vector<1x16x16xf32> to vector<16x16xf32>
    %19 = vector.shape_cast %16 : vector<16x16xf32> to vector<1x16x16xf32>
    tpu.vector_store %arg5[%c0_8, %c0_9, %c0_10], %19 {strides = array<i32>} : memref<1x16x16xf32, #tpu.memory_space<vmem>>, vector<1x16x16xf32>,
    return
  }
  func.func @transform_0(%arg0: i32, %arg1: i32, %arg2: i32) -> (i32, i32, i32) {
    %c0_i32 = arith.constant 0 : i32
    %c0_i32_0 = arith.constant 0 : i32
    return %arg0, %arg1, %c0_i32 : i32, i32, i32
  }
  func.func @transform_1(%arg0: i32, %arg1: i32, %arg2: i32) -> (i32, i32, i32) {
    %c0_i32 = arith.constant 0 : i32
    %c0_i32_0 = arith.constant 0 : i32
    return %arg0, %c0_i32, %arg2 : i32, i32, i32
  }
  func.func @transform_2(%arg0: i32, %arg1: i32, %arg2: i32) -> (i32, i32, i32) {
    %c0_i32 = arith.constant 0 : i32
    return %arg0, %arg1, %arg2 : i32, i32, i32
  }
}

</mosaic_0001>

<bundles_post_ra>
// kernel: tpu_custom_call.1
= control target key start
LH: loop header
LB: loop body
LE: loop exit
PB: predicated region body
PF: predicated region fallthrough
CT: control target
= control target key end

     0   :  { %7 = vsyncpa [#allocation3], 0  ;;  %s740_s0 = inlined_call_operand.vmem [shape: f32[2,16,2], index: 0, kind: input, shape index: {}]   ;;  %s741_s1 = inlined_call_operand.vmem [shape: f32[2,2,16], index: 1, kind: input, shape index: {}]   ;;  %s742_s2 = inlined_call_operand.hbm [shape: f32[2,16,16], index: 2, kind: output, shape index: {}]  }
   0x1   :  { %9 = vsyncpa [#allocation3 + $0x1], 0  ;;  %s622_s9 = smov 0   ;;  %s624_s10 = smov 0  }
   0x2   :  { %s626_s11 = smov 0   ;;  %s628_s12 = smov 0  }
   0x3   :  { %s630_s13 = smov 0   ;;  %s632_s14 = smov 0  }
   0x4 LB: > { %s440_s15 = sadd.s32 4294967295, %s602_s14   ;;  %s441_s16 = sadd.s32 4294967294, %s602_s14   ;;  %s602_s14 = sphi %s632_s14, %s15_s14   ;;  %s598_s13 = sphi %s630_s13, %s749_s13   ;;  %s594_s12 = sphi %s628_s12, %s748_s12   ;;  %s590_s11 = sphi %s626_s11, %s747_s11   ;;  %s586_s10 = sphi %s624_s10, %s746_s10   ;;  %s582_s9 = sphi %s622_s9, %s745_s9  }
   0x5   : > { %s34_s17 = sadd.s32 1, %s598_s13  ;;  %s101_s18 = sadd.s32 1, %s590_s11 }
   0x6   : > { %p36_p0 = scmp.ge.s32.totalorder %s34_s17, 2  ;;  %p111_p1 = scmp.ne.s32.totalorder %s590_s11, %s586_s10 }
   0x7   : > { %p112_p2 = scmp.eq.s32.totalorder %s440_s15, 1  ;;  %p117_p3 = scmp.ne.s32.totalorder %s586_s10, %s582_s9 }
   0x8   : > { %s751_s17 = smov (%p36_p0, %s34_s17), 0  ;;  %p118_p5 = scmp.eq.s32.totalorder %s441_s16, 1 }
   0x9   : > { %p662_p4 = por %p112_p2, %p111_p1  ;;  %s94_s20 = ssub.s32 %s598_s13, %s751_s17 }
   0xa   : > { %p444_p6 = scmp.ge.s32.totalorder %s602_s14, 1  ;;  %p99_p7 = scmp.eq.s32.totalorder %s94_s20, 0 }
   0xb   : > { %p669_p8 = por %p118_p5, %p117_p3  ;;  %p159_p9 = scmp.lt.s32.totalorder %s602_s14, 3 }
   0xc   : > { %s675_s22 = scalar_select %p99_p7, %s590_s11, %s101_s18  }
   0xd   : > { %p160_p10 = pnand %p444_p6, %p159_p9 }
   0xe   : > { %p193_p11 = scmp.lt.s32.totalorder (!%p160_p10), %s594_s12, 1  ;;  %vm237_vm0 = vcmask (!%p160_p10), 1041408   ;;  %vm215_vm1 = vcmask (!%p160_p10), 15360   ;;  %vm223_vm2 = vcmask (!%p160_p10), 123904   ;;  %s189_s4 = sand.u32 (!%p160_p10), 1, %s586_s10   ;;  %vm322_vm3 = vcmask (!%p160_p10), 130048  }
   0xf   : > { %163 = sbr.rel (%p160_p10) target bundleno = 261 (0x105), region = 28  ;;  %s445_s5 = sshll.u32 (!%p160_p10), %s189_s4, 4 }
  0x10   : > { %s191_s6 = scalar_lea.vmem (!%p160_p10), [#allocation2], %s445_s5  ;;  %s458_s8 = sshll.u32 (!%p160_p10), %s594_s12, 8 }
  0x11   : > { %s342_s7 = sshll.u32 (!%p160_p10), %s191_s6, 4  ;;  %s690_s18 = scalar_lea.hbm (!%p160_p10), %s742_s2, %s458_s8  ;;  %s692_s7 = int_to_ptr.vmem [resolvable:$true] %s342_s7 }
  0x12   : > { %s524_s20 = scalar_lea.vmem (!%p160_p10), %s692_s7, 256 }
  0x13   : > { %p525_p12 = scmp.ne.s32.totalorder (!%p160_p10), %s692_s7, %s524_s20 }
  0x15   : > { %p526_p13 = pnand (!%p160_p10), %p525_p12, %p662_p4 }
  0x16   : > { %s194_s23 = scalar_select %p193_p11, %s594_s12, 1 }
  0x17   : > { %s694_s12 = scalar_lea.sflag [#allocation3], %s189_s4  ;;  %p527_p0 = pneg %p526_p13 }
  0x18   : > { %s448_s24 = sshll.u32 %s194_s23, 1  ;;  %s457_s25 = sshll.u32 %s194_s23, 4 }
  0x19   : > { %s208_s28 = scalar_lea.vmem %s741_s1, %s448_s24  ;;  %s200_s3 = scalar_lea.vmem %s740_s0, %s457_s25 }
  0x1a   : > { %v212_v0 = vld [vmem:[%s208_s28] sm:$0x3]  ;;  %v211_v2 = vld [vmem:[%s200_s3 + $0x8] sm:$0xff]  ;;  %s604_s23 = smov [#allocation2]  }
  0x1b   : > { %v210_v1 = vld [vmem:[%s200_s3] sm:$0xff]  ;;  %462 = vmatprep.subr.msk.mxu0 %vm237_vm0, %v212_v0  ;;  %v214_v4 = vmul.f32 %v211_v2, %v211_v2  ;;  %v222_v7 = vmul.f32 %v212_v0, %v212_v0  ;;  %s528_s24 = sshll.u32 %s604_s23, 4  ;;  %s529_s24 = int_to_ptr.vmem [resolvable:$false] %s528_s24 }
  0x1c   : > { %v213_v3 = vmul.f32 %v210_v1, %v210_v1  ;;  %464 = vmatprep.mubr.msk.f32.mxu0 %vm215_vm1, %v210_v1  ;;  %463 = vmatpush3.msk.msra.mxu0 %vm237_vm0, %v212_v0  ;;  %s530_s25 = scalar_lea.vmem %s529_s24, 512  ;;  %p531_p1 = scmp.lt.s32.totalorder %s692_s7, %s529_s24 }
  0x1d   : > { %465 = vmatmul.mubr.msk.f32.vlgmr.msra.gmra.mrb[0].mxu0 %vm215_vm1, %v211_v2  ;;  %v219_v6 = vsel %vm215_vm1, %v214_v4, 0.0  ;;  %v224_v8 = vsel %vm223_vm2, %v222_v7, 0.0  ;;  %p532_p2 = scmp.lt.s32.totalorder %s530_s25, %s524_s20 }
  0x1e   : > { %v216_v5 = vsel %vm215_vm1, %v213_v3, 0.0  ;;  %v225_v9 = vrot.slane %v224_v8, 4 }
  0x1f   : > { %217 = vadd.xlane.f32.xlu0 %v216_v5  ;;  %p533_p3 = por %p532_p2, %p531_p1 }
  0x20   : > { %v226_v10 = vadd.f32 %v225_v9, %v224_v8 }
  0x21   : > { %p534_p5 = pnand %p533_p3, %p527_p0 }
  0x22   : > { %v227_v11 = vrot.slane %v226_v10, 2 }
  0x23   : > { %220 = vadd.xlane.f32.xlu0 %v219_v6 }
  0x24   : > { %v228_v12 = vadd.f32 %v227_v11, %v226_v10 }
  0x26   : > { %v229_v14 = vrot.slane %v228_v12, 1 }
  0x28   : > { %v230_v16 = vadd.f32 %v229_v14, %v228_v12 }
  0xac   : > { %v218_v13 = vpop.xlane.xlu0 %217 }
  0xad   : > { %v316_v21 = vadd.f32 %v230_v16, %v218_v13 }
  0xb0   : > { %v221_v15 = vpop.xlane.xlu0 %220 }
  0xb1   : > { %v317_v17 = vadd.f32 %v230_v16, %v221_v15 }
  0xf0   : > { %v466_v18 = vpop.f32.mrb[0].mxu0 }
  0xf1   : > { %v319_v19 = vmul.f32 2.0, %v466_v18  ;;  %v307_v20 = vpop.f32.mrb[1].mxu0 }
  0xf2   : > { %v318_v22 = vmul.f32 2.0, %v307_v20 }
  0xf3   : > { %v321_v23 = vsub.f32 %v317_v17, %v319_v19 }
  0xf4   : > { %v320_v24 = vsub.f32 %v316_v21, %v318_v22 }
  0xf5   : > { %324 = vst.msk [vmem:[%s191_s6 + $0x8] sm:$0xff] %vm322_vm3, %v321_v23 }
  0xf6   : > { %323 = vst.msk [vmem:[%s191_s6] sm:$0xff] %vm322_vm3, %v320_v24 }
  0xf7   : > { %537 = shalt.err (!%p534_p5)
}
  0xf8   : > { %s538_s26 = scalar_lea.hbm %s690_s18, 256  ;;  %s542_s29 = scalar_lea.hbm %s742_s2, 512 }
  0xf9   : > { %p539_p6 = scmp.ne.s32.totalorder %s690_s18, %s538_s26  ;;  %p543_p10 = scmp.lt.u32.totalorder %s690_s18, %s742_s2 }
  0xfa   : > { %p544_p11 = scmp.lt.u32.totalorder %s542_s29, %s538_s26  ;;  %p546_p13 = scmp.lt.u32.totalorder %s538_s26, %s690_s18 }
  0xfb   : > { %p540_p7 = pnand %p539_p6, %p662_p4 }
  0xfc   : > { %p545_p12 = por %p544_p11, %p543_p10 }
  0xfd   : > { %p541_p9 = pneg %p540_p7 }
  0xfe   : > { %p547_p0 = por %p546_p13, %p545_p12 }
 0x100   : > { %p548_p1 = pnand %p547_p0, %p541_p9 }
 0x102   : > { %551 = shalt.err (!%p548_p1)
}
 0x103   : > { %s605_s4 = smov 128   ;;  %s606_s5 = smov 8  }
 0x104   : > { %467 = dma.vmem_to_hbm [thread:$0]  (%p662_p4), %s692_s7, 256, %s690_s18, %s694_s12, %s605_s4, %s605_s4, %s606_s5  }
 0x105 PF: > { %p473_p2 = scmp.ge.s32.totalorder %s602_s14, 2  ;;  %s357_s6 = sand.u32 1, %s582_s9  }
 0x106   : > { %s358_s8 = scalar_lea.sflag [#allocation3], %s357_s6 }
 0x107   : > { %p470_p3 = pnand %p473_p2, %p669_p8 }
 0x109   : > { %577 = dma.done.wait (!%p470_p3), %s358_s8, 256  }
 0x10a   : > { %579 = vsyncadd (!%p470_p3), %s358_s8, 4294967040  ;;  %s15_s14 = sadd.s32 1, %s602_s14   ;;  %s745_s9 = smov %s586_s10 }
 0x10b   : > { %p12_p5 = scmp.ge.s32.totalorder %s15_s14, 4   ;;  %s746_s10 = smov %s590_s11 }
 0x10c   : > { %s747_s11 = smov %s675_s22  ;;  %s748_s12 = smov %s598_s13 }
 0x10d   : > { %s749_s13 = smov %s751_s17  ;;  %14 = sbr.rel (!%p12_p5) target bundleno = 4 (0x4), region = 66 }
 0x114   :  { %363 = vsyncpa [#allocation3], 1 }
 0x115   :  { %365 = vsyncpa [#allocation3 + $0x1], 1 }

</bundles_post_ra>
